<compile_context>
chip_gen: v7x
topology: tpu7x:2x2x1
jax: 0.10.0
libtpu: 0.0.40
codegen_flags: <defaults>
</compile_context>

<pallas_src>
import numpy as np
import jax
import jax.numpy as jnp
from jax.experimental import pallas as pl
from jax.experimental.pallas import tpu as pltpu

_LANE = 128


def _round_up(x, m=_LANE):
    return ((x + m - 1) // m) * m


# ------------------------------ Pallas kernel -------------------------------

def _make_fused_kernel(tac_width):
    """Fused MANTF kernel: 2-layer GCN_relu + (pre-composed affine) patent encoder.

    Refs (all full-array VMEM, gridless call):
      a_ref    (C, C)     symmetric-normalized adjacency (self-loops included)
      h_ref    (C, P)     company features, lane-padded to P
      pat_ref  (R, 2P)    [title|abs|claim|0pad  ||  meta|0pad]  (pos+neg rows)
      w_ref    (4, P, P)  [W_gcn1 | W_gcn2 | W_tac_full | W_meta]  zero-padded
      b_ref    (8, P)     rows 0..2 = b_gcn1 | b_gcn2 | b_enc      zero-padded
      comp_ref (C, P)     GCN output   (cols >= F are exactly zero)
      patf_ref (R, P)     patent factors (cols >= F are exactly zero)
    """
    def kernel(a_ref, h_ref, pat_ref, w_ref, b_ref, comp_ref, patf_ref):
        f32 = jnp.float32
        a = a_ref[...]
        # ---- 2-layer GCN_relu, intermediate never leaves VMEM/vregs ----
        ah = jnp.dot(a, h_ref[...], preferred_element_type=f32)
        h1 = jnp.maximum(
            jnp.dot(ah, w_ref[0], preferred_element_type=f32) + b_ref[0:1, :], 0.0)
        ah2 = jnp.dot(a, h1, preferred_element_type=f32)
        comp_ref[...] = jnp.maximum(
            jnp.dot(ah2, w_ref[1], preferred_element_type=f32) + b_ref[1:2, :], 0.0)
        # ---- patent encoder (purely affine in the reference -> pre-composed) ----
        tac = pat_ref[:, :tac_width]
        meta = pat_ref[:, tac_width:]
        patf_ref[...] = (jnp.dot(tac, w_ref[2], preferred_element_type=f32)
                         + jnp.dot(meta, w_ref[3], preferred_element_type=f32)
                         + b_ref[2:3, :])
    return kernel


def mantf_fused(adj, h_pad, pat_in, w_stack, b_stack, *, pad):
    C = adj.shape[0]
    R = pat_in.shape[0]
    vmem = pl.BlockSpec(memory_space=pltpu.MemorySpace.VMEM)
    return pl.pallas_call(
        _make_fused_kernel(pad),
        out_shape=(jax.ShapeDtypeStruct((C, pad), jnp.float32),
                   jax.ShapeDtypeStruct((R, pad), jnp.float32)),
        in_specs=[vmem] * 5,
        out_specs=(vmem, vmem),
    )(adj, h_pad, pat_in, w_stack, b_stack)


# ------------------------------- JAX glue ------------------------------------

def triple_sum(pla, de, pat):
    # r1+r2+r3 per row; 8x32 elementwise+reduce is pure launch overhead as a
    # Pallas kernel -> leave to XLA fusion.
    return jnp.sum(pla * de + pla * pat + pat * de, axis=-1)


def init_params(key, cfg):
    C = cfg['company_num']
    F = cfg['factor_size']
    Bt = cfg['bert_size']
    M = cfg['meta_size']
    ks = jax.random.split(key, 12)
    gain = float(np.sqrt(2.0))  # nn.init.calculate_gain('relu')

    def xavier(k, fan_out, fan_in):
        std = gain * np.sqrt(2.0 / (fan_in + fan_out))
        return (std * jax.random.normal(k, (fan_out, fan_in))).astype(jnp.float32)

    # torch Linear weights are (out, in); we store W^T so everything is x @ W.
    return dict(
        comp_feat=jax.random.normal(ks[5], (C, F), jnp.float32),
        # masks: reference uses 5**0.5 * randn(1, F)
        comp_mask_pla=(np.sqrt(5.0)
                       * jax.random.normal(ks[6], (1, F))).astype(jnp.float32),
        comp_mask_def=(np.sqrt(5.0)
                       * jax.random.normal(ks[7], (1, F))).astype(jnp.float32),
        w_gcn1=xavier(ks[8], F, F).T, b_gcn1=jnp.zeros((1, F), jnp.float32),
        w_gcn2=xavier(ks[9], F, F).T, b_gcn2=jnp.zeros((1, F), jnp.float32),
        w_title=xavier(ks[0], Bt, Bt).T, b_title=jnp.zeros((1, Bt), jnp.float32),
        w_abs=xavier(ks[1], Bt, Bt).T, b_abs=jnp.zeros((1, Bt), jnp.float32),
        w_claim=xavier(ks[2], Bt, Bt).T, b_claim=jnp.zeros((1, Bt), jnp.float32),
        w_text=xavier(ks[3], 3 * Bt, 3 * Bt).T,               # (3Bt, 3Bt)
        b_text=jnp.zeros((1, 3 * Bt), jnp.float32),
        w_mlp=xavier(ks[4], F, 3 * Bt + M).T,                 # (3Bt+M, F)
        b_mlp=jnp.zeros((1, F), jnp.float32),
    )


def build_adj(n):
    # synthetic company graph: ring + self loops, symmetric-normalized (GCN "both")
    a = np.zeros((n, n), np.float32)
    for i in range(n):
        j = (i + 1) % n
        a[i, j] = 1.0
        a[j, i] = 1.0
    a += np.eye(n, dtype=np.float32)
    dinv = 1.0 / np.sqrt(a.sum(1))
    a = a * dinv[:, None] * dinv[None, :]
    return jnp.asarray(a)


def _pack_operands(params, cfg, tac, meta):
    """In-forward (gradient-preserving) composition + lane-dense padding of all
    kernel operands.  Returns (h_pad, pat_in, w_stack, b_stack, pad)."""
    F = cfg['factor_size']
    Bt = cfg['bert_size']
    M = cfg['meta_size']
    P = _round_up(max(F, 3 * Bt, M))          # = 128 at toy sizes

    Wt, Wa, Wc = params['w_title'], params['w_abs'], params['w_claim']
    Wtext, btext = params['w_text'], params['b_text']
    Wm, bm = params['w_mlp'], params['b_mlp']

    # Pre-compose the (purely affine) encoder:
    #   tac @ W_tac_full + meta @ W_meta + b_enc
    W_enc_tac = jnp.concatenate([Wt @ Wtext[:Bt],
                                 Wa @ Wtext[Bt:2 * Bt],
                                 Wc @ Wtext[2 * Bt:]], axis=0)        # (3Bt, 3Bt)
    b_tac = jnp.concatenate([params['b_title'], params['b_abs'],
                             params['b_claim']], axis=-1)             # (1, 3Bt)
    b_text_full = b_tac @ Wtext + btext                                # (1, 3Bt)
    W_full_tac = W_enc_tac @ Wm[:3 * Bt]                               # (3Bt, F)
    W_meta = Wm[3 * Bt:]                                               # (M, F)
    b_enc = b_text_full @ Wm[:3 * Bt] + bm                             # (1, F)

    def pad2(x):
        return jnp.pad(x, ((0, P - x.shape[0]), (0, P - x.shape[1])))

    w_stack = jnp.stack([pad2(params['w_gcn1']), pad2(params['w_gcn2']),
                         pad2(W_full_tac), pad2(W_meta)])              # (4, P, P)

    b_stack = jnp.zeros((8, P), jnp.float32)
    b_stack = b_stack.at[0, :F].set(params['b_gcn1'][0])
    b_stack = b_stack.at[1, :F].set(params['b_gcn2'][0])
    b_stack = b_stack.at[2, :F].set(b_enc[0])

    h_pad = jnp.pad(params['comp_feat'], ((0, 0), (0, P - F)))          # (C, P)
    pat_in = jnp.concatenate(
        [jnp.pad(tac, ((0, 0), (0, P - 3 * Bt))),
         jnp.pad(meta, ((0, 0), (0, P - M)))], axis=-1)                 # (R, 2P)
    return h_pad, pat_in, w_stack, b_stack, P


# ------------------------------- forward pass --------------------------------

def mantf_forward(params, cfg, adj,
                  p_pla_idx, p_def_idx, p_pat_meta, p_pat_title, p_pat_abs, p_pat_claim,
                  n_pla_idx, n_def_idx, n_pat_meta, n_pat_title, n_pat_abs, n_pat_claim,
                  noise_key):
    r_var, u_var, v_var = cfg['r_var'], cfg['u_var'], cfg['v_var']
    p_var, g_var, q_var = cfg['p_var'], cfg['g_var'], cfg['q_var']
    lambda0 = cfg['lambda0']
    lambda1 = 0.5 * (r_var / u_var)
    lambda2 = 0.5 * (r_var / v_var)
    lambda3 = 0.5 * (r_var / p_var)
    lambda4 = 0.5 * (r_var / g_var)
    lambda5 = 0.5 * (r_var / q_var)
    F = cfg['factor_size']

    # ---- pack all kernel operands (pos+neg patents batched into one slab) ----
    B = p_pat_meta.shape[0]
    tac = jnp.concatenate(
        [jnp.concatenate([p_pat_title, p_pat_abs, p_pat_claim], axis=-1),
         jnp.concatenate([n_pat_title, n_pat_abs, n_pat_claim], axis=-1)], axis=0)
    meta = jnp.concatenate([p_pat_meta, n_pat_meta], axis=0)
    h_pad, pat_in, w_stack, b_stack, P = _pack_operands(params, cfg, tac, meta)

    # ---- single fused Pallas call: 2-layer GCN + patent encoder ----
    comp_pad, patf_pad = mantf_fused(adj, h_pad, pat_in, w_stack, b_stack, pad=P)
    comp_feat = comp_pad[:, :F]
    pat_factor = patf_pad[:, :F]
    p_pat_factor = pat_factor[:B]
    n_pat_factor = pat_factor[B:]

    mask_pla = jax.nn.sigmoid(params['comp_mask_pla'])
    mask_def = jax.nn.sigmoid(params['comp_mask_def'])
    pla_feat = comp_feat * mask_pla
    def_feat = comp_feat * mask_def

    p_pla_factor = pla_feat[p_pla_idx]
    p_def_factor = def_feat[p_def_idx]
    n_pla_factor = pla_feat[n_pla_idx]
    n_def_factor = def_feat[n_def_idx]

    nk = jax.random.split(noise_key, 8)
    p_pla_emb = p_pla_factor + (u_var ** 0.5) * jax.random.normal(nk[0], p_pla_factor.shape)
    p_def_emb = p_def_factor + (v_var ** 0.5) * jax.random.normal(nk[1], p_def_factor.shape)
    n_pla_emb = n_pla_factor + (u_var ** 0.5) * jax.random.normal(nk[2], n_pla_factor.shape)
    n_def_emb = n_def_factor + (v_var ** 0.5) * jax.random.normal(nk[3], n_def_factor.shape)
    p_pat_emb = p_pat_factor + (p_var ** 0.5) * jax.random.normal(nk[4], p_pat_factor.shape)
    n_pat_emb = n_pat_factor + (p_var ** 0.5) * jax.random.normal(nk[5], n_pat_factor.shape)

    p_res = triple_sum(p_pla_emb, p_def_emb, p_pat_emb)
    n_res = triple_sum(n_pla_emb, n_def_emb, n_pat_emb)
    p_res = p_res + (r_var ** 0.5) * jax.random.normal(nk[6], p_res.shape)
    n_res = n_res + (r_var ** 0.5) * jax.random.normal(nk[7], n_res.shape)

    loss = jnp.mean(-jax.nn.log_sigmoid(p_res - n_res))

    def frob(x):
        return jnp.sqrt(jnp.sum(x * x))

    loss0 = sum(frob(e) for e in [p_pla_emb, n_pla_emb, p_def_emb,
                                  n_def_emb, p_pat_emb, n_pat_emb])
    loss1 = frob(p_pla_factor - p_pla_emb) + frob(n_pla_factor - n_pla_emb)
    loss2 = frob(p_def_factor - p_def_emb) + frob(n_def_factor - n_def_emb)
    loss3 = frob(p_pat_factor - p_pat_emb) + frob(n_pat_factor - n_pat_emb)
    loss4 = (frob(params['w_title']) + frob(params['w_abs'])
             + frob(params['w_claim']) + frob(params['w_text'])
             + frob(params['w_mlp']))
    loss5 = frob(params['w_gcn1'])   # reference mcen_norm regularizes conv_1 only

    loss = (loss + lambda0 * loss0 + lambda1 * loss1 + lambda2 * loss2
            + lambda3 * loss3 + lambda4 * loss4 + lambda5 * loss5)
    return {'loss': loss, 'loss0': loss0, 'loss1': loss1, 'loss2': loss2,
            'loss3': loss3, 'loss4': loss4, 'loss5': loss5}


# ----------------------------------- main ------------------------------------

if __name__ == "__main__":
    cfg = dict(company_num=16, factor_size=32, bert_size=32, meta_size=100,
               r_var=1.0, u_var=2.0, v_var=2.0, p_var=2.0, g_var=2.0, q_var=2.0,
               lambda0=0.01)
    B = 8

    key = jax.random.PRNGKey(0)
    k_param, k_data, k_noise = jax.random.split(key, 3)

    params = init_params(k_param, cfg)
    adj = build_adj(cfg['company_num'])

    dk = jax.random.split(k_data, 12)
    C, Bt, M = cfg['company_num'], cfg['bert_size'], cfg['meta_size']
    p_pla_idx = jax.random.randint(dk[0], (B,), 0, C)
    p_def_idx = jax.random.randint(dk[1], (B,), 0, C)
    n_pla_idx = jax.random.randint(dk[2], (B,), 0, C)
    n_def_idx = jax.random.randint(dk[3], (B,), 0, C)
    p_pat_meta = jax.random.normal(dk[4], (B, M), jnp.float32)
    n_pat_meta = jax.random.normal(dk[5], (B, M), jnp.float32)
    p_pat_title = jax.random.normal(dk[6], (B, Bt), jnp.float32)
    p_pat_abs = jax.random.normal(dk[7], (B, Bt), jnp.float32)
    p_pat_claim = jax.random.normal(dk[8], (B, Bt), jnp.float32)
    n_pat_title = jax.random.normal(dk[9], (B, Bt), jnp.float32)
    n_pat_abs = jax.random.normal(dk[10], (B, Bt), jnp.float32)
    n_pat_claim = jax.random.normal(dk[11], (B, Bt), jnp.float32)

    out = mantf_forward(params, cfg, adj,
                        p_pla_idx, p_def_idx, p_pat_meta, p_pat_title, p_pat_abs, p_pat_claim,
                        n_pla_idx, n_def_idx, n_pat_meta, n_pat_title, n_pat_abs, n_pat_claim,
                        k_noise)
    jax.block_until_ready(out)
    assert np.isfinite(float(out['loss']))
    print("KERNEL_OK")
</pallas_src>

<mosaic_0001>
module attributes {stable_mosaic.version = 11 : i64} {
  func.func @kernel(%arg0: memref<16x16xf32, #tpu.memory_space<vmem>>, %arg1: memref<16x128xf32, #tpu.memory_space<vmem>>, %arg2: memref<16x256xf32, #tpu.memory_space<vmem>>, %arg3: memref<4x128x128xf32, #tpu.memory_space<vmem>>, %arg4: memref<8x128xf32, #tpu.memory_space<vmem>>, %arg5: memref<16x128xf32, #tpu.memory_space<vmem>>, %arg6: memref<16x128xf32, #tpu.memory_space<vmem>>) attributes {dimension_semantics = [], scalar_prefetch = 0 : i64, scratch_operands = 0 : i64, tpu.core_type = #tpu.core_type<tc>} {
    %c0 = arith.constant 0 : index
    %c0_0 = arith.constant 0 : index
    %0 = vector.load %arg0[%c0, %c0_0] : memref<16x16xf32, #tpu.memory_space<vmem>>, vector<16x16xf32>
    %c0_1 = arith.constant 0 : index
    %c0_2 = arith.constant 0 : index
    %1 = vector.load %arg1[%c0_1, %c0_2] : memref<16x128xf32, #tpu.memory_space<vmem>>, vector<16x128xf32>
    %cst = arith.constant dense<0.000000e+00> : vector<16x128xf32>
    %2 = tpu.matmul %0, %1, %cst {dimension_numbers = #tpu.dot_dimension_numbers<[1], [0], [0], [1], [0, 0, 1, 1], [], []>} : vector<16x16xf32>, vector<16x128xf32>, vector<16x128xf32> -> vector<16x128xf32>
    %c0_3 = arith.constant 0 : index
    %c0_4 = arith.constant 0 : index
    %c0_5 = arith.constant 0 : index
    %3 = vector.load %arg3[%c0_3, %c0_4, %c0_5] : memref<4x128x128xf32, #tpu.memory_space<vmem>>, vector<1x128x128xf32>
    %4 = vector.shape_cast %3 : vector<1x128x128xf32> to vector<128x128xf32>
    %cst_6 = arith.constant dense<0.000000e+00> : vector<16x128xf32>
    %5 = tpu.matmul %2, %4, %cst_6 {dimension_numbers = #tpu.dot_dimension_numbers<[1], [0], [0], [1], [0, 0, 1, 1], [], []>} : vector<16x128xf32>, vector<128x128xf32>, vector<16x128xf32> -> vector<16x128xf32>
    %c0_7 = arith.constant 0 : index
    %c0_8 = arith.constant 0 : index
    %6 = vector.load %arg4[%c0_7, %c0_8] : memref<8x128xf32, #tpu.memory_space<vmem>>, vector<1x128xf32>
    %7 = vector.broadcast %6 : vector<1x128xf32> to vector<16x128xf32>
    %8 = arith.addf %5, %7 : vector<16x128xf32>
    %cst_9 = arith.constant 0.000000e+00 : f32
    %9 = vector.broadcast %cst_9 : f32 to vector<16x128xf32>
    %10 = arith.maximumf %8, %9 : vector<16x128xf32>
    %cst_10 = arith.constant dense<0.000000e+00> : vector<16x128xf32>
    %11 = tpu.matmul %0, %10, %cst_10 {dimension_numbers = #tpu.dot_dimension_numbers<[1], [0], [0], [1], [0, 0, 1, 1], [], []>} : vector<16x16xf32>, vector<16x128xf32>, vector<16x128xf32> -> vector<16x128xf32>
    %c1 = arith.constant 1 : index
    %c0_11 = arith.constant 0 : index
    %c0_12 = arith.constant 0 : index
    %12 = vector.load %arg3[%c1, %c0_11, %c0_12] : memref<4x128x128xf32, #tpu.memory_space<vmem>>, vector<1x128x128xf32>
    %13 = vector.shape_cast %12 : vector<1x128x128xf32> to vector<128x128xf32>
    %cst_13 = arith.constant dense<0.000000e+00> : vector<16x128xf32>
    %14 = tpu.matmul %11, %13, %cst_13 {dimension_numbers = #tpu.dot_dimension_numbers<[1], [0], [0], [1], [0, 0, 1, 1], [], []>} : vector<16x128xf32>, vector<128x128xf32>, vector<16x128xf32> -> vector<16x128xf32>
    %c1_14 = arith.constant 1 : index
    %c0_15 = arith.constant 0 : index
    %15 = vector.load %arg4[%c1_14, %c0_15] : memref<8x128xf32, #tpu.memory_space<vmem>>, vector<1x128xf32>
    %16 = vector.broadcast %15 : vector<1x128xf32> to vector<16x128xf32>
    %17 = arith.addf %14, %16 : vector<16x128xf32>
    %cst_16 = arith.constant 0.000000e+00 : f32
    %18 = vector.broadcast %cst_16 : f32 to vector<16x128xf32>
    %19 = arith.maximumf %17, %18 : vector<16x128xf32>
    %c0_17 = arith.constant 0 : index
    %c0_18 = arith.constant 0 : index
    %20 = vector.load %arg5[%c0_17, %c0_18] : memref<16x128xf32, #tpu.memory_space<vmem>>, vector<16x128xf32>
    tpu.vector_store %arg5[%c0_17, %c0_18], %19 {strides = array<i32>} : memref<16x128xf32, #tpu.memory_space<vmem>>, vector<16x128xf32>,
    %c0_19 = arith.constant 0 : index
    %c0_20 = arith.constant 0 : index
    %21 = vector.load %arg2[%c0_19, %c0_20] : memref<16x256xf32, #tpu.memory_space<vmem>>, vector<16x128xf32>
    %c0_21 = arith.constant 0 : index
    %c128 = arith.constant 128 : index
    %22 = vector.load %arg2[%c0_21, %c128] : memref<16x256xf32, #tpu.memory_space<vmem>>, vector<16x128xf32>
    %c2 = arith.constant 2 : index
    %c0_22 = arith.constant 0 : index
    %c0_23 = arith.constant 0 : index
    %23 = vector.load %arg3[%c2, %c0_22, %c0_23] : memref<4x128x128xf32, #tpu.memory_space<vmem>>, vector<1x128x128xf32>
    %24 = vector.shape_cast %23 : vector<1x128x128xf32> to vector<128x128xf32>
    %cst_24 = arith.constant dense<0.000000e+00> : vector<16x128xf32>
    %25 = tpu.matmul %21, %24, %cst_24 {dimension_numbers = #tpu.dot_dimension_numbers<[1], [0], [0], [1], [0, 0, 1, 1], [], []>} : vector<16x128xf32>, vector<128x128xf32>, vector<16x128xf32> -> vector<16x128xf32>
    %c3 = arith.constant 3 : index
    %c0_25 = arith.constant 0 : index
    %c0_26 = arith.constant 0 : index
    %26 = vector.load %arg3[%c3, %c0_25, %c0_26] : memref<4x128x128xf32, #tpu.memory_space<vmem>>, vector<1x128x128xf32>
    %27 = vector.shape_cast %26 : vector<1x128x128xf32> to vector<128x128xf32>
    %cst_27 = arith.constant dense<0.000000e+00> : vector<16x128xf32>
    %28 = tpu.matmul %22, %27, %cst_27 {dimension_numbers = #tpu.dot_dimension_numbers<[1], [0], [0], [1], [0, 0, 1, 1], [], []>} : vector<16x128xf32>, vector<128x128xf32>, vector<16x128xf32> -> vector<16x128xf32>
    %29 = arith.addf %25, %28 : vector<16x128xf32>
    %c2_28 = arith.constant 2 : index
    %c0_29 = arith.constant 0 : index
    %30 = vector.load %arg4[%c2_28, %c0_29] : memref<8x128xf32, #tpu.memory_space<vmem>>, vector<1x128xf32>
    %31 = vector.broadcast %30 : vector<1x128xf32> to vector<16x128xf32>
    %32 = arith.addf %29, %31 : vector<16x128xf32>
    %c0_30 = arith.constant 0 : index
    %c0_31 = arith.constant 0 : index
    %33 = vector.load %arg6[%c0_30, %c0_31] : memref<16x128xf32, #tpu.memory_space<vmem>>, vector<16x128xf32>
    tpu.vector_store %arg6[%c0_30, %c0_31], %32 {strides = array<i32>} : memref<16x128xf32, #tpu.memory_space<vmem>>, vector<16x128xf32>,
    return
  }
}

</mosaic_0001>

<bundles_post_ra>
// kernel: tpu_custom_call.1
= control target key start
LH: loop header
LB: loop body
LE: loop exit
PB: predicated region body
PF: predicated region fallthrough
CT: control target
= control target key end

     0   :  { %12 = vsyncpa [#allocation3], 0  ;;  %s1358_s0 = inlined_call_operand.hbm [shape: f32[16,16], index: 0, kind: input, shape index: {}]   ;;  %s1359_s1 = inlined_call_operand.hbm [shape: f32[16,128], index: 1, kind: input, shape index: {}]   ;;  %s1360_s2 = inlined_call_operand.hbm [shape: f32[16,256], index: 2, kind: input, shape index: {}]   ;;  %s1361_s3 = inlined_call_operand.hbm [shape: f32[4,128,128], index: 3, kind: input, shape index: {}]   ;;  %s1362_s4 = inlined_call_operand.vmem [shape: f32[8,128], index: 4, kind: input, shape index: {}]   ;;  %s1363_s5 = inlined_call_operand.hbm [shape: f32[16,128], index: 5, kind: output, shape index: {0}]   ;;  %s1364_s6 = inlined_call_operand.hbm [shape: f32[16,128], index: 6, kind: output, shape index: {1}]  }
   0x1   :  { %13 = vsyncpa [#allocation6], 0 }
   0x2   :  { %14 = vsyncpa [#allocation9], 0 }
   0x3   :  { %15 = vsyncpa [#allocation4], 0 }
   0x4   :  { %16 = vsyncpa [#allocation12], 0  ;;  %s1202_s21 = smov [#allocation5]   ;;  %s1203_s23 = smov [#allocation2]  }
   0x5   :  { %s34_s22 = sshll.u32 %s1202_s21, 4  ;;  %s22_s24 = sshll.u32 %s1203_s23, 4  ;;  %s35_s22 = int_to_ptr.vmem [resolvable:$true] %s34_s22  ;;  %s1247_s24 = int_to_ptr.vmem [resolvable:$true] %s22_s24 }
   0x6   :  { %s1060_s27 = scalar_lea.hbm %s1359_s1, 256 }
   0x7   :  { %p1061_p0 = scmp.ne.s32.totalorder %s1359_s1, %s1060_s27  ;;  %p1064_p1 = scmp.lt.u32.totalorder %s1060_s27, %s1359_s1 }
   0x9   :  { %p1066_p2 = pnand %p1064_p1, %p1061_p0 }
   0xb   :  { %1069 = shalt.err (!%p1066_p2)
}
   0xc   :  { %s1070_s8 = scalar_lea.vmem %s35_s22, 256  ;;  %p1075_p4 = scmp.lt.s32.totalorder %s35_s22, %s35_s22 }
   0xd   :  { %p1071_p3 = scmp.ne.s32.totalorder %s35_s22, %s1070_s8  ;;  %p1076_p5 = scmp.lt.s32.totalorder %s1070_s8, %s1070_s8 }
   0xf   :  { %p1077_p6 = por %p1076_p5, %p1075_p4 }
  0x11   :  { %p1078_p7 = pnand %p1077_p6, %p1071_p3 }
  0x13   :  { %1081 = shalt.err (!%p1078_p7)
}
  0x14   :  { %s1204_s9 = smov 128   ;;  %s1205_s10 = smov 8  }
  0x15   :  { %40 = dma.hbm_to_vmem [thread:$0]  %s1359_s1, 256, %s35_s22, [#allocation6], %s1204_s9, %s1204_s9, %s1205_s10  }
  0x16   :  { %s1082_s15 = scalar_lea.hbm %s1358_s0, 256 }
  0x17   :  { %p1083_p8 = scmp.ne.s32.totalorder %s1358_s0, %s1082_s15  ;;  %p1086_p9 = scmp.lt.u32.totalorder %s1082_s15, %s1358_s0 }
  0x19   :  { %p1088_p10 = pnand %p1086_p9, %p1083_p8 }
  0x1b   :  { %1091 = shalt.err (!%p1088_p10)
}
  0x1c   :  { %s1092_s20 = scalar_lea.vmem %s1247_s24, 256  ;;  %p1097_p12 = scmp.lt.s32.totalorder %s1247_s24, %s1247_s24 }
  0x1d   :  { %p1093_p11 = scmp.ne.s32.totalorder %s1247_s24, %s1092_s20  ;;  %p1098_p13 = scmp.lt.s32.totalorder %s1092_s20, %s1092_s20 }
  0x1f   :  { %p1099_p0 = por %p1098_p13, %p1097_p12 }
  0x21   :  { %p1100_p1 = pnand %p1099_p0, %p1093_p11 }
  0x23   :  { %1103 = shalt.err (!%p1100_p1)
}
  0x24   :  { %28 = dma.hbm_to_vmem [thread:$0]  %s1358_s0, 256, %s1247_s24, [#allocation3], %s1204_s9, %s1204_s9, %s1205_s10  }
  0x25   :  { %s1206_s22 = smov [#allocation7]   ;;  %s1104_s27 = scalar_lea.hbm %s1360_s2, 512 }
  0x26   :  { %s46_s23 = sshll.u32 %s1206_s22, 4  ;;  %p1105_p2 = scmp.ne.s32.totalorder %s1360_s2, %s1104_s27  ;;  %s47_s23 = int_to_ptr.vmem [resolvable:$true] %s46_s23 }
  0x27   :  { %p1108_p3 = scmp.lt.u32.totalorder %s1104_s27, %s1360_s2 }
  0x29   :  { %p1110_p4 = pnand %p1108_p3, %p1105_p2 }
  0x2b   :  { %1113 = shalt.err (!%p1110_p4)
}
  0x2c   :  { %s1114_s8 = scalar_lea.vmem %s47_s23, 512  ;;  %p1119_p6 = scmp.lt.s32.totalorder %s47_s23, %s47_s23 }
  0x2d   :  { %p1115_p5 = scmp.ne.s32.totalorder %s47_s23, %s1114_s8  ;;  %p1120_p7 = scmp.lt.s32.totalorder %s1114_s8, %s1114_s8 }
  0x2f   :  { %p1121_p8 = por %p1120_p7, %p1119_p6 }
  0x31   :  { %p1122_p9 = pnand %p1121_p8, %p1115_p5 }
  0x33   :  { %1125 = shalt.err (!%p1122_p9)
}
  0x34   :  { %s1207_s0 = smov 256   ;;  %s1208_s24 = smov 16  }
  0x35   :  { %52 = dma.hbm_to_vmem [thread:$0]  %s1360_s2, 512, %s47_s23, [#allocation6], %s1207_s0, %s1207_s0, %s1208_s24  }
  0x36   :  { %s1209_s13 = smov [#allocation8]   ;;  %s1126_s17 = scalar_lea.hbm %s1361_s3, 8192 }
  0x37   :  { %s58_s14 = sshll.u32 %s1209_s13, 4  ;;  %p1127_p10 = scmp.ne.s32.totalorder %s1361_s3, %s1126_s17  ;;  %s59_s14 = int_to_ptr.vmem [resolvable:$true] %s58_s14 }
  0x38   :  { %p1130_p11 = scmp.lt.u32.totalorder %s1126_s17, %s1361_s3 }
  0x3a   :  { %p1132_p12 = pnand %p1130_p11, %p1127_p10 }
  0x3c   :  { %1135 = shalt.err (!%p1132_p12)
}
  0x3d   :  { %s1136_s21 = scalar_lea.vmem %s59_s14, 8192  ;;  %p1141_p0 = scmp.lt.s32.totalorder %s59_s14, %s59_s14 }
  0x3e   :  { %p1137_p13 = scmp.ne.s32.totalorder %s59_s14, %s1136_s21  ;;  %p1142_p1 = scmp.lt.s32.totalorder %s1136_s21, %s1136_s21 }
  0x40   :  { %p1143_p2 = por %p1142_p1, %p1141_p0 }
  0x42   :  { %p1144_p3 = pnand %p1143_p2, %p1137_p13 }
  0x44   :  { %1147 = shalt.err (!%p1144_p3)
}
  0x45   :  { %64 = dma.hbm_to_vmem [thread:$0]  %s1361_s3, 8192, %s59_s14, [#allocation9], %s1204_s9, %s1204_s9, %s1205_s10  }
  0x46   :  { %1192 = dma.done.wait [#allocation3], 256  }
  0x47   :  { %1193 = vsyncadd [#allocation3], 4294967040 }
  0x48   :  { %1194 = dma.done.wait [#allocation6], 768  }
  0x49   :  { %1195 = vsyncadd [#allocation6], 4294966528 }
  0x4a   :  { %1196 = dma.done.wait [#allocation9], 8192  }
  0x4b   :  { %1197 = vsyncadd [#allocation9], 4294959104  ;;  %vm83_vm0 = vcmask 130048   ;;  %v81_v0 = vld [vmem:[#allocation5] sm:$0xff]  ;;  %v82_v1 = vld [vmem:[#allocation5 + $0x8] sm:$0xff]  ;;  %s1210_s27 = smov [#allocation11]  }
  0x4c   :  { %v79_v2 = vld [vmem:[#allocation2] sm:$0xff]  ;;  %v912_v3 = vpack.c.bf16 %v82_v1, %v81_v0  ;;  %v166_v5 = vld [vmem:[#allocation8 + $0x8] sm:$0xff]  ;;  %v167_v7 = vld [vmem:[#allocation8 + $0x10] sm:$0xff]  ;;  %s653_s28 = sshll.u32 %s1210_s27, 4  ;;  %s654_s28 = int_to_ptr.vmem [resolvable:$true] %s653_s28 }
  0x4d   :  { %762 = vmatprep.mubr.msk.f32.mxu1 %vm83_vm0, %v79_v2  ;;  %v165_v4 = vld [vmem:[#allocation8] sm:$0xff]  ;;  %v168_v8 = vld [vmem:[#allocation8 + $0x18] sm:$0xff]  ;;  %v170_v11 = vld [vmem:[#allocation8 + $0x28] sm:$0xff]  ;;  %s1148_s29 = scalar_lea.vmem %s654_s28, 256  ;;  %p1153_p5 = scmp.lt.s32.totalorder %s654_s28, %s654_s28 }
  0x4e   :  { %v916_v6 = vpack.c.bf16 %v166_v5, %v165_v4  ;;  %913 = vmatprep.subr.bf16.mxu1 %v912_v3  ;;  %v920_v9 = vpack.c.bf16 %v168_v8, %v167_v7  ;;  %v169_v10 = vld [vmem:[#allocation8 + $0x20] sm:$0xff]  ;;  %v1312_v12 = vld [vmem:[#allocation2 + $0x8] sm:$0xff]  ;;  %v171_v14 = vld [vmem:[#allocation8 + $0x30] sm:$0xff]  ;;  %p1149_p4 = scmp.ne.s32.totalorder %s654_s28, %s1148_s29  ;;  %p1154_p6 = scmp.lt.s32.totalorder %s1148_s29, %s1148_s29 }
  0x4f   :  { %915 = vmatpush3.bf16.msra.mxu1 %v912_v3  ;;  %v924_v13 = vpack.c.bf16 %v170_v11, %v169_v10  ;;  %v172_v15 = vld [vmem:[#allocation8 + $0x38] sm:$0xff]  ;;  %v173_v17 = vld [vmem:[#allocation8 + $0x40] sm:$0xff]  ;;  %v174_v18 = vld [vmem:[#allocation8 + $0x48] sm:$0xff] }
  0x50   :  { %917 = vmatprep.subr.bf16.mxu0 %v916_v6  ;;  %v928_v16 = vpack.c.bf16 %v172_v15, %v171_v14  ;;  %v932_v19 = vpack.c.bf16 %v174_v18, %v173_v17  ;;  %v175_v20 = vld [vmem:[#allocation8 + $0x50] sm:$0xff]  ;;  %v176_v21 = vld [vmem:[#allocation8 + $0x58] sm:$0xff]  ;;  %v177_v23 = vld [vmem:[#allocation8 + $0x60] sm:$0xff]  ;;  %p1155_p7 = por %p1154_p6, %p1153_p5 }
  0x51   :  { %919 = vmatpush3.bf16.msra.mxu0 %v916_v6  ;;  %v936_v22 = vpack.c.bf16 %v176_v21, %v175_v20  ;;  %v178_v24 = vld [vmem:[#allocation8 + $0x68] sm:$0xff]  ;;  %v179_v26 = vld [vmem:[#allocation8 + $0x70] sm:$0xff]  ;;  %v180_v27 = vld [vmem:[#allocation8 + $0x78] sm:$0xff] }
  0x52   :  { %921 = vmatprep.subr.bf16.mxu0 %v920_v9  ;;  %763 = vmatmul.mubr.msk.f32.vlgmr.msra.gmra.mrb[0].mxu1 %vm83_vm0, %v1312_v12  ;;  %v940_v25 = vpack.c.bf16 %v178_v24, %v177_v23  ;;  %v944_v28 = vpack.c.bf16 %v180_v27, %v179_v26  ;;  %v461_v31 = vld [vmem:[#allocation8 + $0x180] sm:$0xff]  ;;  %v462_v32 = vld [vmem:[#allocation8 + $0x188] sm:$0xff]  ;;  %v463_v33 = vld [vmem:[#allocation8 + $0x190] sm:$0xff]  ;;  %p1156_p8 = pnand %p1155_p7, %p1149_p4 }
  0x53   :  { %v984_v34 = vpack.c.bf16 %v462_v32, %v461_v31  ;;  %v464_v35 = vld [vmem:[#allocation8 + $0x198] sm:$0xff]  ;;  %v465_v37 = vld [vmem:[#allocation8 + $0x1a0] sm:$0xff]  ;;  %v466_v38 = vld [vmem:[#allocation8 + $0x1a8] sm:$0xff] }
  0x54   :  { %v988_v36 = vpack.c.bf16 %v464_v35, %v463_v33  ;;  %v992_v39 = vpack.c.bf16 %v466_v38, %v465_v37  ;;  %v441_v40 = vld [vmem:[#allocation7 + $0x8] sm:$0xff]  ;;  %v467_v41 = vld [vmem:[#allocation8 + $0x1b0] sm:$0xff]  ;;  %v468_v42 = vld [vmem:[#allocation8 + $0x1b8] sm:$0xff] }
  0x55   :  { %923 = vmatpush3.bf16.msra.mxu0 %v920_v9  ;;  %985 = vmatprep.subr.bf16.mxu1 %v984_v34  ;;  %v996_v43 = vpack.c.bf16 %v468_v42, %v467_v41  ;;  %v469_v44 = vld [vmem:[#allocation8 + $0x1c0] sm:$0xff]  ;;  %v470_v45 = vld [vmem:[#allocation8 + $0x1c8] sm:$0xff]  ;;  %v471_v47 = vld [vmem:[#allocation8 + $0x1d0] sm:$0xff] }
  0x56   :  { %925 = vmatprep.subr.bf16.mxu0 %v924_v13  ;;  %987 = vmatpush3.bf16.msra.mxu1 %v984_v34  ;;  %v1000_v46 = vpack.c.bf16 %v470_v45, %v469_v44  ;;  %v472_v48 = vld [vmem:[#allocation8 + $0x1d8] sm:$0xff]  ;;  %v473_v50 = vld [vmem:[#allocation8 + $0x1e0] sm:$0xff]  ;;  %v474_v51 = vld [vmem:[#allocation8 + $0x1e8] sm:$0xff] }
  0x57   :  { %989 = vmatprep.subr.bf16.mxu1 %v988_v36  ;;  %874 = vmatprep.mubr.f32.mxu1 %v441_v40  ;;  %v1004_v49 = vpack.c.bf16 %v472_v48, %v471_v47  ;;  %v1008_v52 = vpack.c.bf16 %v474_v51, %v473_v50  ;;  %v475_v53 = vld [vmem:[#allocation8 + $0x1f0] sm:$0xff]  ;;  %v476_v54 = vld [vmem:[#allocation8 + $0x1f8] sm:$0xff]  ;;  %v444_v56 = vld [vmem:[#allocation8 + $0x100] sm:$0xff] }
  0x58   :  { %v1012_v55 = vpack.c.bf16 %v476_v54, %v475_v53  ;;  %v445_v57 = vld [vmem:[#allocation8 + $0x108] sm:$0xff]  ;;  %v446_v59 = vld [vmem:[#allocation8 + $0x110] sm:$0xff]  ;;  %v447_v60 = vld [vmem:[#allocation8 + $0x118] sm:$0xff] }
  0x59   :  { %927 = vmatpush3.bf16.msra.mxu0 %v924_v13  ;;  %v1016_v58 = vpack.c.bf16 %v445_v57, %v444_v56  ;;  %v442_v61 = vld [vmem:[#allocation7 + $0x18] sm:$0xff]  ;;  %v1020_v62 = vpack.c.bf16 %v447_v60, %v446_v59  ;;  %v439_v63 = vld [vmem:[#allocation7] sm:$0xff]  ;;  %v449_v1 = vld [vmem:[#allocation8 + $0x128] sm:$0xff] }
  0x5a   :  { %929 = vmatprep.subr.bf16.mxu0 %v928_v16  ;;  %991 = vmatpush3.bf16.msra.mxu1 %v988_v36  ;;  %v448_v0 = vld [vmem:[#allocation8 + $0x120] sm:$0xff]  ;;  %v450_v3 = vld [vmem:[#allocation8 + $0x130] sm:$0xff]  ;;  %v451_v4 = vld [vmem:[#allocation8 + $0x138] sm:$0xff] }
  0x5b   :  { %993 = vmatprep.subr.bf16.mxu1 %v992_v39  ;;  %v1028_v5 = vpack.c.bf16 %v451_v4, %v450_v3  ;;  %v452_v6 = vld [vmem:[#allocation8 + $0x140] sm:$0xff]  ;;  %v453_v7 = vld [vmem:[#allocation8 + $0x148] sm:$0xff]  ;;  %v454_v9 = vld [vmem:[#allocation8 + $0x150] sm:$0xff] }
  0x5c   :  { %v1032_v8 = vpack.c.bf16 %v453_v7, %v452_v6  ;;  %v455_v10 = vld [vmem:[#allocation8 + $0x158] sm:$0xff]  ;;  %v456_v13 = vld [vmem:[#allocation8 + $0x160] sm:$0xff]  ;;  %v457_v14 = vld [vmem:[#allocation8 + $0x168] sm:$0xff] }
  0x5d   :  { %931 = vmatpush3.bf16.msra.mxu0 %v928_v16  ;;  %v1036_v11 = vpack.c.bf16 %v455_v10, %v454_v9  ;;  %v1040_v15 = vpack.c.bf16 %v457_v14, %v456_v13  ;;  %v458_v16 = vld [vmem:[#allocation8 + $0x170] sm:$0xff]  ;;  %v459_v17 = vld [vmem:[#allocation8 + $0x178] sm:$0xff]  ;;  %v673_v20 = vld [vmem:[%s1362_s4] ss:$0 sm:$0xff] }
  0x5e   :  { %933 = vmatprep.subr.bf16.mxu0 %v932_v19  ;;  %995 = vmatpush3.bf16.msra.mxu1 %v992_v39  ;;  %v1044_v18 = vpack.c.bf16 %v459_v17, %v458_v16  ;;  %v339_v26 = vld [vmem:[#allocation8 + $0x80] sm:$0xff]  ;;  %v340_v27 = vld [vmem:[#allocation8 + $0x88] sm:$0xff]  ;;  %v341_v31 = vld [vmem:[#allocation8 + $0x90] sm:$0xff] }
  0x5f   :  { %997 = vmatprep.subr.bf16.mxu1 %v996_v43  ;;  %v342_v32 = vld [vmem:[#allocation8 + $0x98] sm:$0xff]  ;;  %v343_v34 = vld [vmem:[#allocation8 + $0xa0] sm:$0xff]  ;;  %v344_v35 = vld [vmem:[#allocation8 + $0xa8] sm:$0xff] }
  0x60   :  { %v956_v33 = vpack.c.bf16 %v342_v32, %v341_v31  ;;  %v960_v36 = vpack.c.bf16 %v344_v35, %v343_v34  ;;  %v345_v37 = vld [vmem:[#allocation8 + $0xb0] sm:$0xff]  ;;  %v346_v38 = vld [vmem:[#allocation8 + $0xb8] sm:$0xff]  ;;  %v347_v40 = vld [vmem:[#allocation8 + $0xc0] sm:$0xff] }
  0x61   :  { %935 = vmatpush3.bf16.msra.mxu0 %v932_v19  ;;  %v440_v19 = vld [vmem:[#allocation7 + $0x10] sm:$0xff]  ;;  %v964_v39 = vpack.c.bf16 %v346_v38, %v345_v37  ;;  %v348_v41 = vld [vmem:[#allocation8 + $0xc8] sm:$0xff]  ;;  %v350_v44 = vld [vmem:[#allocation8 + $0xd8] sm:$0xff] }
  0x62   :  { %937 = vmatprep.subr.bf16.mxu0 %v936_v22  ;;  %999 = vmatpush3.bf16.msra.mxu1 %v996_v43  ;;  %v968_v42 = vpack.c.bf16 %v348_v41, %v347_v40  ;;  %v349_v43 = vld [vmem:[#allocation8 + $0xd0] sm:$0xff]  ;;  %v677_v51 = vld [vmem:[%s1362_s4 + $0x2] ss:$0 sm:$0xff] }
  0x63   :  { %1001 = vmatprep.subr.bf16.mxu1 %v1000_v46  ;;  %v972_v45 = vpack.c.bf16 %v350_v44, %v349_v43  ;;  %v353_v48 = vld [vmem:[#allocation8 + $0xf0] sm:$0xff] }
  0x65   :  { %939 = vmatpush3.bf16.msra.mxu0 %v936_v22 }
  0x66   :  { %941 = vmatprep.subr.bf16.mxu0 %v940_v25  ;;  %1003 = vmatpush3.bf16.msra.mxu1 %v1000_v46  ;;  %v351_v46 = vld [vmem:[#allocation8 + $0xe0] sm:$0xff] }
  0x67   :  { %1005 = vmatprep.subr.bf16.mxu1 %v1004_v49 }
  0x69   :  { %943 = vmatpush3.bf16.msra.mxu0 %v940_v25 }
  0x6a   :  { %945 = vmatprep.subr.bf16.mxu0 %v944_v28  ;;  %1007 = vmatpush3.bf16.msra.mxu1 %v1004_v49  ;;  %v354_v49 = vld [vmem:[#allocation8 + $0xf8] sm:$0xff] }
  0x6b   :  { %1009 = vmatprep.subr.bf16.mxu1 %v1008_v52  ;;  %v980_v50 = vpack.c.bf16 %v354_v49, %v353_v48 }
  0x6d   :  { %947 = vmatpush3.bf16.msra.mxu0 %v944_v28 }
  0x6e   :  { %1011 = vmatpush3.bf16.msra.mxu1 %v1008_v52 }
  0x6f   :  { %1013 = vmatprep.subr.bf16.mxu1 %v1012_v55 }
  0x72   :  { %1015 = vmatpush3.bf16.msra.mxu1 %v1012_v55 }
  0x73   :  { %1017 = vmatprep.subr.bf16.mxu1 %v1016_v58 }
  0x75   :  { %875 = vmatmul.mubr.f32.vlgmr.msra.gmra.mrb[2].mxu1 %v442_v61 }
  0x76   :  { %1019 = vmatpush3.bf16.msra.mxu1 %v1016_v58  ;;  %909 = vmatprep.mubr.f32.mxu1 %v439_v63 }
  0x77   :  { %1021 = vmatprep.subr.bf16.mxu1 %v1020_v62 }
  0x7a   :  { %1023 = vmatpush3.bf16.msra.mxu1 %v1020_v62 }
 0x125   :  { %v764_v29 = vpop.f32.mrb[0].mxu1 }
 0x126   :  { %v156_v30 = vpop.f32.mrb[1].mxu1 }
 0x127   :  { %797 = vmatprep.mubr.f32.mxu0 %v156_v30  ;;  %v952_v30 = vpack.c.bf16 %v340_v27, %v339_v26 }
 0x128   :  { %798 = vmatmul.mubr.f32.vlgmr.msra.gmra.mrb[0].mxu0 %v764_v29 }
 0x129   :  { %804 = vmatprep.mubr.msk.f32.mxu0 %vm83_vm0, %v79_v2  ;;  %v1024_v2 = vpack.c.bf16 %v449_v1, %v448_v0 }
 0x12b   :  { %1025 = vmatprep.subr.bf16.mxu1 %v1024_v2 }
 0x12c   :  { %1027 = vmatpush3.bf16.msra.mxu1 %v1024_v2 }
 0x12d   :  { %1029 = vmatprep.subr.bf16.mxu1 %v1028_v5 }
 0x130   :  { %1031 = vmatpush3.bf16.msra.mxu1 %v1028_v5 }
 0x131   :  { %1033 = vmatprep.subr.bf16.mxu1 %v1032_v8 }
 0x134   :  { %1035 = vmatpush3.bf16.msra.mxu1 %v1032_v8 }
 0x135   :  { %1037 = vmatprep.subr.bf16.mxu1 %v1036_v11 }
 0x138   :  { %1039 = vmatpush3.bf16.msra.mxu1 %v1036_v11 }
 0x139   :  { %1041 = vmatprep.subr.bf16.mxu1 %v1040_v15 }
 0x13c   :  { %1043 = vmatpush3.bf16.msra.mxu1 %v1040_v15 }
 0x13d   :  { %1045 = vmatprep.subr.bf16.mxu1 %v1044_v18 }
 0x140   :  { %1047 = vmatpush3.bf16.msra.mxu1 %v1044_v18 }
 0x143   :  { %910 = vmatmul.mubr.f32.vlgmr.msra.gmra.mrb[2].mxu1 %v440_v19 }
 0x1fb   :  { %v799_v21 = vpop.f32.mrb[0].mxu0 }
 0x1fc   :  { %v258_v22 = vadd.f32 %v799_v21, %v673_v20  ;;  %v252_v23 = vpop.f32.mrb[1].mxu0 }
 0x1fd   :  { %v253_v24 = vadd.f32 %v673_v20, %v252_v23 }
 0x1fe   :  { %v262_v25 = vmax.f32 %v258_v22, 0.0 }
 0x1ff   :  { %v261_v28 = vmax.f32 %v253_v24, 0.0 }
 0x201   :  { %v948_v29 = vpack.c.bf16 %v262_v25, %v261_v28 }
 0x203   :  { %949 = vmatprep.subr.bf16.mxu0 %v948_v29 }
 0x204   :  { %951 = vmatpush3.bf16.msra.mxu0 %v948_v29 }
 0x205   :  { %953 = vmatprep.subr.bf16.mxu0 %v952_v30 }
 0x207   :  { %805 = vmatmul.mubr.msk.f32.vlgmr.msra.gmra.mrb[2].mxu0 %vm83_vm0, %v1312_v12  ;;  %v352_v12 = vld [vmem:[#allocation8 + $0xe8] sm:$0xff] }
 0x208   :  { %955 = vmatpush3.bf16.msra.mxu0 %v952_v30  ;;  %v976_v47 = vpack.c.bf16 %v352_v12, %v351_v46 }
 0x209   :  { %957 = vmatprep.subr.bf16.mxu0 %v956_v33 }
 0x20c   :  { %959 = vmatpush3.bf16.msra.mxu0 %v956_v33 }
 0x20d   :  { %961 = vmatprep.subr.bf16.mxu0 %v960_v36 }
 0x210   :  { %963 = vmatpush3.bf16.msra.mxu0 %v960_v36 }
 0x211   :  { %965 = vmatprep.subr.bf16.mxu0 %v964_v39 }
 0x214   :  { %967 = vmatpush3.bf16.msra.mxu0 %v964_v39 }
 0x215   :  { %969 = vmatprep.subr.bf16.mxu0 %v968_v42 }
 0x216   :  { %v911_v52 = vpop.f32.mrb[2].mxu1 }
 0x217   :  { %v633_v53 = vadd.f32 %v911_v52, %v677_v51  ;;  %v618_v54 = vpop.f32.mrb[3].mxu1 }
 0x218   :  { %971 = vmatpush3.bf16.msra.mxu0 %v968_v42  ;;  %v632_v55 = vadd.f32 %v677_v51, %v618_v54 }
 0x219   :  { %973 = vmatprep.subr.bf16.mxu0 %v972_v45  ;;  %635 = vst [vmem:[#allocation11 + $0x8] sm:$0xff] %v633_v53 }
 0x21a   :  { %634 = vst [vmem:[#allocation11] sm:$0xff] %v632_v55 }
 0x21c   :  { %975 = vmatpush3.bf16.msra.mxu0 %v972_v45 }
 0x21d   :  { %977 = vmatprep.subr.bf16.mxu0 %v976_v47 }
 0x220   :  { %979 = vmatpush3.bf16.msra.mxu0 %v976_v47 }
 0x221   :  { %981 = vmatprep.subr.bf16.mxu0 %v980_v50 }
 0x224   :  { %983 = vmatpush3.bf16.msra.mxu0 %v980_v50 }
 0x2da   :  { %v806_v56 = vpop.f32.mrb[2].mxu0 }
 0x2db   :  { %v329_v57 = vpop.f32.mrb[3].mxu0 }
 0x2dc   :  { %839 = vmatprep.mubr.f32.mxu0 %v329_v57 }
 0x2dd   :  { %840 = vmatmul.mubr.f32.vlgmr.msra.gmra.mrb[4].mxu0 %v806_v56 }
 0x2de   :  { %1159 = shalt.err (!%p1156_p8)
}
 0x2df   :  { %s1160_s8 = scalar_lea.hbm %s1364_s6, 256 }
 0x2e0   :  { %p1161_p9 = scmp.ne.s32.totalorder %s1364_s6, %s1160_s8  ;;  %p1164_p10 = scmp.lt.u32.totalorder %s1160_s8, %s1364_s6 }
 0x2e2   :  { %p1166_p11 = pnand %p1164_p10, %p1161_p9 }
 0x2e4   :  { %1169 = shalt.err (!%p1166_p11)
}
 0x2e5   :  { %659 = dma.vmem_to_hbm [thread:$0]  %s654_s28, 256, %s1364_s6, [#allocation12], %s1204_s9, %s1204_s9, %s1205_s10  }
 0x2e6   :  { %v676_v58 = vld [vmem:[%s1362_s4 + $0x1] ss:$0 sm:$0xff]  ;;  %s1211_s17 = smov [#allocation10]  }
 0x2e7   :  { %s641_s18 = sshll.u32 %s1211_s17, 4  ;;  %s642_s18 = int_to_ptr.vmem [resolvable:$true] %s641_s18 }
 0x2e8   :  { %s1170_s19 = scalar_lea.vmem %s642_s18, 256  ;;  %p1175_p13 = scmp.lt.s32.totalorder %s642_s18, %s642_s18 }
 0x2e9   :  { %p1171_p12 = scmp.ne.s32.totalorder %s642_s18, %s1170_s19  ;;  %p1176_p0 = scmp.lt.s32.totalorder %s1170_s19, %s1170_s19 }
 0x2eb   :  { %p1177_p1 = por %p1176_p0, %p1175_p13 }
 0x2ed   :  { %p1178_p2 = pnand %p1177_p1, %p1171_p12 }
 0x3b0   :  { %v841_v59 = vpop.f32.mrb[4].mxu0 }
 0x3b1   :  { %v432_v60 = vadd.f32 %v841_v59, %v676_v58  ;;  %v426_v61 = vpop.f32.mrb[5].mxu0 }
 0x3b2   :  { %v427_v62 = vadd.f32 %v676_v58, %v426_v61 }
 0x3b3   :  { %v436_v63 = vmax.f32 %v432_v60, 0.0 }
 0x3b4   :  { %v435_v0 = vmax.f32 %v427_v62, 0.0 }
 0x3b5   :  { %438 = vst [vmem:[#allocation10 + $0x8] sm:$0xff] %v436_v63 }
 0x3b6   :  { %437 = vst [vmem:[#allocation10] sm:$0xff] %v435_v0 }
 0x3b7   :  { %1181 = shalt.err (!%p1178_p2)
}
 0x3b8   :  { %s1182_s20 = scalar_lea.hbm %s1363_s5, 256 }
 0x3b9   :  { %p1183_p3 = scmp.ne.s32.totalorder %s1363_s5, %s1182_s20  ;;  %p1186_p4 = scmp.lt.u32.totalorder %s1182_s20, %s1363_s5 }
 0x3bb   :  { %p1188_p5 = pnand %p1186_p4, %p1183_p3 }
 0x3bd   :  { %1191 = shalt.err (!%p1188_p5)
}
 0x3be   :  { %647 = dma.vmem_to_hbm [thread:$0]  %s642_s18, 256, %s1363_s5, [#allocation4], %s1204_s9, %s1204_s9, %s1205_s10  }
 0x3bf   :  { %1198 = dma.done.wait [#allocation4], 256  }
 0x3c0   :  { %1199 = vsyncadd [#allocation4], 4294967040 }
 0x3c1   :  { %1200 = dma.done.wait [#allocation12], 256  }
 0x3c2   :  { %1201 = vsyncadd [#allocation12], 4294967040 }
 0x3c3   :  { %666 = vsyncpa [#allocation3], 1 }
 0x3c4   :  { %667 = vsyncpa [#allocation6], 1 }
 0x3c5   :  { %668 = vsyncpa [#allocation9], 1 }
 0x3c6   :  { %669 = vsyncpa [#allocation4], 1 }
 0x3c7   :  { %670 = vsyncpa [#allocation12], 1 }

</bundles_post_ra>
